<compile_context>
chip_gen: v5e
topology: v5e:2x2
jax: 0.10.0
libtpu: 0.0.40
codegen_flags: <defaults>
</compile_context>

<pallas_src>
import functools

import numpy as np
import jax
import jax.numpy as jnp
from jax import lax
from jax.experimental import pallas as pl
from jax.experimental.pallas import tpu as pltpu

LATENT = 5        # true latent dim (layer3 = 5 in the PyTorch module)
LAT_PAD = 128     # one full lane group
EPS_W = 8         # eps HBM width (sublane granularity), lanes LATENT:8 are zero
MAX_TILE_B = 512  # >=512 rows ~ 85% of HBM roofline for streaming tiles


def _round_up(n, m):
    return ((n + m - 1) // m) * m


def _cdiv(a, b):
    return -(-a // b)


# ----------------------------------------------------------------------------
# kernel
# ----------------------------------------------------------------------------
def vae_kernel(x_ref, eps_ref,
               w1_ref, b1_ref, w2_ref, b2_ref, w3_ref, b3_ref,
               w4_ref, b4_ref, w5_ref, b5_ref, w6_ref, b6_ref,
               recon_ref, packed_ref):
    f32, bf16 = jnp.float32, jnp.bfloat16

    def dense(h, w_ref, b_ref, relu=True):
        # bf16 operands on the MXU, f32 accumulate, f32 bias / elementwise.
        y = jnp.dot(h.astype(bf16), w_ref[...], preferred_element_type=f32) + b_ref[...]
        return jnp.maximum(y, 0.0) if relu else y

    x = x_ref[...]
    tb = x.shape[0]

    # ---- encode ----
    h1 = dense(x, w1_ref, b1_ref)
    h2 = dense(h1, w2_ref, b2_ref)
    # fused fc31/fc32: one lane-dense matmul, split at the 128-lane boundary.
    ml = dense(h2, w3_ref, b3_ref, relu=False)          # (tb, 2*LAT_PAD)
    mu = ml[:, :LAT_PAD]                                # lanes LATENT:128 exactly 0
    logvar = ml[:, LAT_PAD:]

    # ---- reparametrize: z = eps * exp(logvar / 2) + mu ----
    # eps arrives 8 lanes wide; expand to 128 lanes with an exact 0/1 selection
    # matmul so the padded latent lanes of z stay exactly zero.
    r = lax.broadcasted_iota(jnp.int32, (EPS_W, LAT_PAD), 0)
    c = lax.broadcasted_iota(jnp.int32, (EPS_W, LAT_PAD), 1)
    sel = ((r == c) & (c < LATENT)).astype(f32)
    eps = jnp.dot(eps_ref[...], sel, preferred_element_type=f32)
    z = eps * jnp.exp(logvar * 0.5) + mu

    # ---- decode (fc4 uses only the 8 real latent lanes: K=8, not 128) ----
    h4 = dense(z[:, :EPS_W], w4_ref, b4_ref)
    h5 = dense(h4, w5_ref, b5_ref)
    recon_ref[...] = dense(h5, w6_ref, b6_ref, relu=False)

    # ---- pack mu|logvar|z into one lane-dense 128-wide output slab ----
    lane = lax.broadcasted_iota(jnp.int32, (tb, LAT_PAD), 1)
    packed_ref[...] = jnp.where(
        lane < LATENT, mu,
        jnp.where(lane < 2 * LATENT, pltpu.roll(logvar, shift=LATENT, axis=1),
                  jnp.where(lane < 3 * LATENT,
                            pltpu.roll(z, shift=2 * LATENT, axis=1), 0.0)))


# ----------------------------------------------------------------------------
# params
# ----------------------------------------------------------------------------
def _linear_init(kw, kb, fan_in, fan_out):
    """nn.Linear-style init; weight returned already transposed to (in, out)."""
    bound = float(1.0 / np.sqrt(fan_in))
    w = jax.random.uniform(kw, (fan_in, fan_out), jnp.float32, -bound, bound)
    b = jax.random.uniform(kb, (1, fan_out), jnp.float32, -bound, bound)
    return w, b


def init_params(key, input_size):
    layer1 = input_size // 2
    layer2 = input_size // 4
    d_pad = _round_up(input_size, LAT_PAD)
    ks = jax.random.split(key, 14)
    w1, b1 = _linear_init(ks[0], ks[1], input_size, layer1)
    w2, b2 = _linear_init(ks[2], ks[3], layer1, layer2)
    w31, b31 = _linear_init(ks[4], ks[5], layer2, LATENT)
    w32, b32 = _linear_init(ks[6], ks[7], layer2, LATENT)
    w4, b4 = _linear_init(ks[8], ks[9], LATENT, layer2)
    w5, b5 = _linear_init(ks[10], ks[11], layer2, layer1)
    w6, b6 = _linear_init(ks[12], ks[13], layer1, input_size)

    # zero-pad fc1 input rows and fc6 output cols/bias to a 128-lane multiple
    # (exact) so x reads and recon stores are lane-dense.
    w1p = jnp.zeros((d_pad, layer1), jnp.float32).at[:input_size].set(w1)
    w6p = jnp.zeros((layer1, d_pad), jnp.float32).at[:, :input_size].set(w6)
    b6p = jnp.zeros((1, d_pad), jnp.float32).at[:, :input_size].set(b6)

    # fuse fc31/fc32 into one (layer2, 2*128) matmul: mu weights in lanes 0:5 of
    # the first 128, logvar weights in lanes 0:5 of the second 128.
    w3p = jnp.zeros((layer2, 2 * LAT_PAD), jnp.float32)
    w3p = w3p.at[:, :LATENT].set(w31).at[:, LAT_PAD:LAT_PAD + LATENT].set(w32)
    b3p = jnp.zeros((1, 2 * LAT_PAD), jnp.float32)
    b3p = b3p.at[:, :LATENT].set(b31).at[:, LAT_PAD:LAT_PAD + LATENT].set(b32)

    # fc4: keep K at the 8-row sublane granularity (rows LATENT:8 are zero).
    w4p = jnp.zeros((EPS_W, layer2), jnp.float32).at[:LATENT].set(w4)

    bf = lambda w: w.astype(jnp.bfloat16)   # MXU-native weights; biases stay f32
    return {
        "fc1_w": bf(w1p), "fc1_b": b1,
        "fc2_w": bf(w2), "fc2_b": b2,
        "fc3_w": bf(w3p), "fc3_b": b3p,
        "fc4_w": bf(w4p), "fc4_b": b4,
        "fc5_w": bf(w5), "fc5_b": b5,
        "fc6_w": bf(w6p), "fc6_b": b6p,
    }


# ----------------------------------------------------------------------------
# hardware queries (trace-time; never fatal)
# ----------------------------------------------------------------------------
def _hw_vmem_bytes():
    try:
        return int(pltpu.get_tpu_info().vmem_capacity_bytes)
    except Exception:
        return 64 << 20   # conservative default (v7x per-TensorCore VMEM)


def _tc_per_chip():
    try:
        info = pltpu.get_tpu_info()
        for name in ("num_cores", "num_tensorcores", "tensorcores_per_chip",
                     "core_count"):
            v = getattr(info, name, None)
            if v:
                return max(1, int(v))
    except Exception:
        pass
    # Rounding the tile count up to a multiple of 2 is harmless on 1-TC parts
    # (same padded batch, one extra ~0.35us grid step), so default to 2.
    return 2


# ----------------------------------------------------------------------------
# forward
# ----------------------------------------------------------------------------
@jax.jit
def vae_forward(x, eps, params):
    batch, input_size = x.shape
    layer1 = params["fc2_w"].shape[0]
    layer2 = params["fc2_w"].shape[1]
    d_pad = params["fc1_w"].shape[0]

    weights = (
        params["fc1_w"], params["fc1_b"], params["fc2_w"], params["fc2_b"],
        params["fc3_w"], params["fc3_b"], params["fc4_w"], params["fc4_b"],
        params["fc5_w"], params["fc5_b"], params["fc6_w"], params["fc6_b"],
    )
    weight_bytes = sum(int(np.prod(a.shape)) * a.dtype.itemsize for a in weights)

    # VMEM accounting: weights request single-buffering but are budgeted 2x as a
    # safety margin; I/O tiles are double-buffered; plus f32 intermediates.
    io_row = 4 * (d_pad + EPS_W) + 4 * (d_pad + LAT_PAD)
    act_row = 4 * (2 * layer1 + 2 * layer2 + 6 * LAT_PAD + d_pad)

    def vmem_needed(tb):
        return 2 * weight_bytes + 2 * tb * io_row + tb * act_row + (4 << 20)

    hw_vmem = _hw_vmem_bytes()
    usable = min((hw_vmem * 3) // 4, 100 << 20)   # ~48 MiB on v7x, ~96 MiB on v5e/v6e

    tb_cap = MAX_TILE_B
    while tb_cap > 8 and vmem_needed(tb_cap) > usable:
        tb_cap //= 2
    if vmem_needed(tb_cap) > usable:
        # TODO(synk): K/N-tile the fc1/fc6 weights with an accumulator for models
        # whose weights alone exceed the per-core VMEM budget.
        raise ValueError(
            f"VAE weights ({weight_bytes / 2**20:.1f} MiB) do not fit the "
            f"{usable / 2**20:.0f} MiB VMEM budget; weight tiling not implemented.")

    # Batch tiling: pad only to the 8-row sublane granularity, with the tile
    # count a multiple of the TensorCores per chip (v7x load balance).
    num_tiles = _cdiv(batch, tb_cap)
    tc = _tc_per_chip()
    if num_tiles > 1 and tc > 1:
        num_tiles = _round_up(num_tiles, tc)
    tile_b = _round_up(_cdiv(batch, num_tiles), 8)
    padded_b = tile_b * num_tiles

    x_p = jnp.zeros((padded_b, d_pad), jnp.float32).at[:batch, :input_size].set(x)
    eps_p = jnp.zeros((padded_b, EPS_W), jnp.float32).at[:batch, :LATENT].set(eps)

    def resident(shape):
        # Full-array block, constant index -> loaded once and kept resident.
        # Single-buffered: double-buffering a never-changing block only doubles
        # its VMEM footprint (matters on v7x's 64 MiB).
        try:
            return pl.BlockSpec(shape, lambda i: (0, 0), pipeline_mode=pl.Buffered(1))
        except TypeError:   # older BlockSpec without pipeline_mode
            return pl.BlockSpec(shape, lambda i: (0, 0))

    in_specs = [
        pl.BlockSpec((tile_b, d_pad), lambda i: (i, 0)),    # x (lane-dense)
        pl.BlockSpec((tile_b, EPS_W), lambda i: (i, 0)),    # eps (8 lanes)
    ] + [resident(a.shape) for a in weights]
    out_specs = (
        pl.BlockSpec((tile_b, d_pad), lambda i: (i, 0)),    # recon (unmasked vst)
        pl.BlockSpec((tile_b, LAT_PAD), lambda i: (i, 0)),  # packed mu|logvar|z
    )
    out_shapes = (
        jax.ShapeDtypeStruct((padded_b, d_pad), jnp.float32),
        jax.ShapeDtypeStruct((padded_b, LAT_PAD), jnp.float32),
    )

    flops = 2 * padded_b * (
        d_pad * layer1 + layer1 * layer2 + layer2 * 2 * LAT_PAD
        + EPS_W * LAT_PAD + EPS_W * layer2 + layer2 * layer1 + layer1 * d_pad)
    cost = pl.CostEstimate(flops=int(flops),
                           transcendentals=int(padded_b * LAT_PAD),
                           bytes_accessed=int(weight_bytes + padded_b * io_row))

    vmem_limit = int(min(max(vmem_needed(tile_b), 32 << 20), usable))

    recon_p, packed_p = pl.pallas_call(
        vae_kernel,
        out_shape=out_shapes,
        grid=(num_tiles,),
        in_specs=in_specs,
        out_specs=out_specs,
        compiler_params=pltpu.CompilerParams(
            dimension_semantics=("parallel",),
            vmem_limit_bytes=vmem_limit),
        cost_estimate=cost,
    )(x_p, eps_p, *weights)

    recon = recon_p[:batch, :input_size]
    mu = packed_p[:batch, :LATENT]
    logvar = packed_p[:batch, LATENT:2 * LATENT]
    z = packed_p[:batch, 2 * LATENT:3 * LATENT]
    return recon, mu, logvar, z


# ----------------------------------------------------------------------------
# pure-JAX reference (same bf16-stored weights, f32 matmuls)
# ----------------------------------------------------------------------------
def vae_forward_ref(x, eps, params):
    f = lambda a: a.astype(jnp.float32)
    mm = functools.partial(jnp.matmul, precision=lax.Precision.HIGHEST)
    input_size = x.shape[1]
    h1 = jnp.maximum(mm(x, f(params["fc1_w"])[:input_size]) + params["fc1_b"], 0.0)
    h2 = jnp.maximum(mm(h1, f(params["fc2_w"])) + params["fc2_b"], 0.0)
    mu = mm(h2, f(params["fc3_w"])[:, :LATENT]) + params["fc3_b"][:, :LATENT]
    logvar = (mm(h2, f(params["fc3_w"])[:, LAT_PAD:LAT_PAD + LATENT])
              + params["fc3_b"][:, LAT_PAD:LAT_PAD + LATENT])
    z = eps * jnp.exp(0.5 * logvar) + mu
    h4 = jnp.maximum(mm(z, f(params["fc4_w"])[:LATENT]) + params["fc4_b"], 0.0)
    h5 = jnp.maximum(mm(h4, f(params["fc5_w"])) + params["fc5_b"], 0.0)
    recon = (mm(h5, f(params["fc6_w"])[:, :input_size])
             + params["fc6_b"][:, :input_size])
    return recon, mu, logvar, z


def _check(x, eps, params, atol=3e-2, rtol=2e-2):
    # Tolerance is relaxed vs. the old f32 kernel because matmul operands are
    # bf16 in-kernel (weights are shared with the reference, so only activation
    # rounding differs -- observed error is ~10x below this bound).
    outs = vae_forward(x, eps, params)
    jax.block_until_ready(outs)
    refs = vae_forward_ref(x, eps, params)
    for name, got, want in zip(("recon", "mu", "logvar", "z"), outs, refs):
        assert got.shape == want.shape, (name, got.shape, want.shape)
        assert jnp.allclose(got, want, atol=atol, rtol=rtol), name
    return outs


if __name__ == "__main__":
    key = jax.random.PRNGKey(0)

    # primary small test: input_size=32 -> layer1=16, layer2=8, latent=5
    input_size = 32
    batch = 8
    key, kx, keps, kparams = jax.random.split(key, 4)
    x = jax.random.normal(kx, (batch, input_size), jnp.float32)
    eps = jax.random.normal(keps, (batch, LATENT), jnp.float32)
    params = init_params(kparams, input_size)
    recon, mu, logvar, z = _check(x, eps, params)
    assert recon.shape == x.shape and mu.shape == (batch, LATENT)

    # second test: multi-tile grid with tight batch padding (1040 -> 1056 rows,
    # an even number of tiles) and the 128-padded recon path at input_size=64.
    input_size2 = 64
    batch2 = 1040
    key, kx2, keps2, kparams2 = jax.random.split(key, 4)
    x2 = jax.random.normal(kx2, (batch2, input_size2), jnp.float32)
    eps2 = jax.random.normal(keps2, (batch2, LATENT), jnp.float32)
    params2 = init_params(kparams2, input_size2)
    _check(x2, eps2, params2)

    print("KERNEL_OK")
</pallas_src>

<mosaic_0001>
module attributes {stable_mosaic.version = 11 : i64} {
  func.func @vae_kernel(%arg0: i32, %arg1: memref<8x128xf32, #tpu.memory_space<vmem>>, %arg2: memref<8x8xf32, #tpu.memory_space<vmem>>, %arg3: memref<128x16xbf16, #tpu.memory_space<vmem>>, %arg4: memref<1x16xf32, #tpu.memory_space<vmem>>, %arg5: memref<16x8xbf16, #tpu.memory_space<vmem>>, %arg6: memref<1x8xf32, #tpu.memory_space<vmem>>, %arg7: memref<8x256xbf16, #tpu.memory_space<vmem>>, %arg8: memref<1x256xf32, #tpu.memory_space<vmem>>, %arg9: memref<8x8xbf16, #tpu.memory_space<vmem>>, %arg10: memref<1x8xf32, #tpu.memory_space<vmem>>, %arg11: memref<8x16xbf16, #tpu.memory_space<vmem>>, %arg12: memref<1x16xf32, #tpu.memory_space<vmem>>, %arg13: memref<16x128xbf16, #tpu.memory_space<vmem>>, %arg14: memref<1x128xf32, #tpu.memory_space<vmem>>, %arg15: memref<8x128xf32, #tpu.memory_space<vmem>>, %arg16: memref<8x128xf32, #tpu.memory_space<vmem>>) attributes {dimension_semantics = [#tpu.dimension_semantics<parallel>], iteration_bounds = array<i64: 1>, scalar_prefetch = 0 : i64, scratch_operands = 0 : i64, tpu.core_type = #tpu.core_type<tc>, window_params = [{transform_indices = @transform_0, window_bounds = array<i64: 8, 128>}, {transform_indices = @transform_1, window_bounds = array<i64: 8, 8>}, {pipeline_mode = #tpu.pipeline_mode<synchronous>, transform_indices = @transform_2, window_bounds = array<i64: 128, 16>}, {pipeline_mode = #tpu.pipeline_mode<synchronous>, transform_indices = @transform_3, window_bounds = array<i64: 1, 16>}, {pipeline_mode = #tpu.pipeline_mode<synchronous>, transform_indices = @transform_4, window_bounds = array<i64: 16, 8>}, {pipeline_mode = #tpu.pipeline_mode<synchronous>, transform_indices = @transform_5, window_bounds = array<i64: 1, 8>}, {pipeline_mode = #tpu.pipeline_mode<synchronous>, transform_indices = @transform_6, window_bounds = array<i64: 8, 256>}, {pipeline_mode = #tpu.pipeline_mode<synchronous>, transform_indices = @transform_7, window_bounds = array<i64: 1, 256>}, {pipeline_mode = #tpu.pipeline_mode<synchronous>, transform_indices = @transform_8, window_bounds = array<i64: 8, 8>}, {pipeline_mode = #tpu.pipeline_mode<synchronous>, transform_indices = @transform_9, window_bounds = array<i64: 1, 8>}, {pipeline_mode = #tpu.pipeline_mode<synchronous>, transform_indices = @transform_10, window_bounds = array<i64: 8, 16>}, {pipeline_mode = #tpu.pipeline_mode<synchronous>, transform_indices = @transform_11, window_bounds = array<i64: 1, 16>}, {pipeline_mode = #tpu.pipeline_mode<synchronous>, transform_indices = @transform_12, window_bounds = array<i64: 16, 128>}, {pipeline_mode = #tpu.pipeline_mode<synchronous>, transform_indices = @transform_13, window_bounds = array<i64: 1, 128>}, {transform_indices = @transform_14, window_bounds = array<i64: 8, 128>}, {transform_indices = @transform_15, window_bounds = array<i64: 8, 128>}]} {
    %c0 = arith.constant 0 : index
    %c0_0 = arith.constant 0 : index
    %0 = vector.load %arg1[%c0, %c0_0] : memref<8x128xf32, #tpu.memory_space<vmem>>, vector<8x128xf32>
    %1 = arith.truncf %0 : vector<8x128xf32> to vector<8x128xbf16>
    %c0_1 = arith.constant 0 : index
    %c0_2 = arith.constant 0 : index
    %2 = vector.load %arg3[%c0_1, %c0_2] : memref<128x16xbf16, #tpu.memory_space<vmem>>, vector<128x16xbf16>
    %cst = arith.constant dense<0.000000e+00> : vector<8x16xf32>
    %3 = tpu.matmul %1, %2, %cst {dimension_numbers = #tpu.dot_dimension_numbers<[1], [0], [0], [1], [0, 0, 1, 1], [], []>} : vector<8x128xbf16>, vector<128x16xbf16>, vector<8x16xf32> -> vector<8x16xf32>
    %c0_3 = arith.constant 0 : index
    %c0_4 = arith.constant 0 : index
    %4 = vector.load %arg4[%c0_3, %c0_4] : memref<1x16xf32, #tpu.memory_space<vmem>>, vector<1x16xf32>
    %5 = vector.broadcast %4 : vector<1x16xf32> to vector<8x16xf32>
    %6 = arith.addf %3, %5 : vector<8x16xf32>
    %cst_5 = arith.constant 0.000000e+00 : f32
    %7 = vector.broadcast %cst_5 : f32 to vector<8x16xf32>
    %8 = arith.maximumf %6, %7 : vector<8x16xf32>
    %9 = arith.truncf %8 : vector<8x16xf32> to vector<8x16xbf16>
    %c0_6 = arith.constant 0 : index
    %c0_7 = arith.constant 0 : index
    %10 = vector.load %arg5[%c0_6, %c0_7] : memref<16x8xbf16, #tpu.memory_space<vmem>>, vector<16x8xbf16>
    %cst_8 = arith.constant dense<0.000000e+00> : vector<8x8xf32>
    %11 = tpu.matmul %9, %10, %cst_8 {dimension_numbers = #tpu.dot_dimension_numbers<[1], [0], [0], [1], [0, 0, 1, 1], [], []>} : vector<8x16xbf16>, vector<16x8xbf16>, vector<8x8xf32> -> vector<8x8xf32>
    %c0_9 = arith.constant 0 : index
    %c0_10 = arith.constant 0 : index
    %12 = vector.load %arg6[%c0_9, %c0_10] : memref<1x8xf32, #tpu.memory_space<vmem>>, vector<1x8xf32>
    %13 = vector.broadcast %12 : vector<1x8xf32> to vector<8x8xf32>
    %14 = arith.addf %11, %13 : vector<8x8xf32>
    %cst_11 = arith.constant 0.000000e+00 : f32
    %15 = vector.broadcast %cst_11 : f32 to vector<8x8xf32>
    %16 = arith.maximumf %14, %15 : vector<8x8xf32>
    %17 = arith.truncf %16 : vector<8x8xf32> to vector<8x8xbf16>
    %c0_12 = arith.constant 0 : index
    %c0_13 = arith.constant 0 : index
    %18 = vector.load %arg7[%c0_12, %c0_13] : memref<8x256xbf16, #tpu.memory_space<vmem>>, vector<8x256xbf16>
    %cst_14 = arith.constant dense<0.000000e+00> : vector<8x256xf32>
    %19 = tpu.matmul %17, %18, %cst_14 {dimension_numbers = #tpu.dot_dimension_numbers<[1], [0], [0], [1], [0, 0, 1, 1], [], []>} : vector<8x8xbf16>, vector<8x256xbf16>, vector<8x256xf32> -> vector<8x256xf32>
    %c0_15 = arith.constant 0 : index
    %c0_16 = arith.constant 0 : index
    %20 = vector.load %arg8[%c0_15, %c0_16] : memref<1x256xf32, #tpu.memory_space<vmem>>, vector<1x256xf32>
    %21 = vector.broadcast %20 : vector<1x256xf32> to vector<8x256xf32>
    %22 = arith.addf %19, %21 : vector<8x256xf32>
    %23 = vector.extract_strided_slice %22 {offsets = [0, 0], sizes = [8, 128], strides = [1, 1]} : vector<8x256xf32> to vector<8x128xf32>
    %24 = vector.extract_strided_slice %22 {offsets = [0, 128], sizes = [8, 128], strides = [1, 1]} : vector<8x256xf32> to vector<8x128xf32>
    %25 = tpu.iota {dimensions = array<i32: 0>} : vector<8x128xi32>
    %26 = tpu.iota {dimensions = array<i32: 1>} : vector<8x128xi32>
    %27 = arith.cmpi eq, %25, %26 : vector<8x128xi32>
    %c5_i32 = arith.constant 5 : i32
    %28 = vector.broadcast %c5_i32 : i32 to vector<8x128xi32>
    %29 = arith.cmpi slt, %26, %28 : vector<8x128xi32>
    %30 = arith.andi %27, %29 : vector<8x128xi1>
    %31 = arith.extui %30 : vector<8x128xi1> to vector<8x128xi32>
    %32 = arith.sitofp %31 : vector<8x128xi32> to vector<8x128xf32>
    %c0_17 = arith.constant 0 : index
    %c0_18 = arith.constant 0 : index
    %33 = vector.load %arg2[%c0_17, %c0_18] : memref<8x8xf32, #tpu.memory_space<vmem>>, vector<8x8xf32>
    %cst_19 = arith.constant dense<0.000000e+00> : vector<8x128xf32>
    %34 = tpu.matmul %33, %32, %cst_19 {dimension_numbers = #tpu.dot_dimension_numbers<[1], [0], [0], [1], [0, 0, 1, 1], [], []>} : vector<8x8xf32>, vector<8x128xf32>, vector<8x128xf32> -> vector<8x128xf32>
    %cst_20 = arith.constant 5.000000e-01 : f32
    %35 = vector.broadcast %cst_20 : f32 to vector<8x128xf32>
    %36 = arith.mulf %24, %35 : vector<8x128xf32>
    %37 = math.exp %36 : vector<8x128xf32>
    %38 = arith.mulf %34, %37 : vector<8x128xf32>
    %39 = arith.addf %38, %23 : vector<8x128xf32>
    %40 = vector.extract_strided_slice %39 {offsets = [0, 0], sizes = [8, 8], strides = [1, 1]} : vector<8x128xf32> to vector<8x8xf32>
    %41 = arith.truncf %40 : vector<8x8xf32> to vector<8x8xbf16>
    %c0_21 = arith.constant 0 : index
    %c0_22 = arith.constant 0 : index
    %42 = vector.load %arg9[%c0_21, %c0_22] : memref<8x8xbf16, #tpu.memory_space<vmem>>, vector<8x8xbf16>
    %cst_23 = arith.constant dense<0.000000e+00> : vector<8x8xf32>
    %43 = tpu.matmul %41, %42, %cst_23 {dimension_numbers = #tpu.dot_dimension_numbers<[1], [0], [0], [1], [0, 0, 1, 1], [], []>} : vector<8x8xbf16>, vector<8x8xbf16>, vector<8x8xf32> -> vector<8x8xf32>
    %c0_24 = arith.constant 0 : index
    %c0_25 = arith.constant 0 : index
    %44 = vector.load %arg10[%c0_24, %c0_25] : memref<1x8xf32, #tpu.memory_space<vmem>>, vector<1x8xf32>
    %45 = vector.broadcast %44 : vector<1x8xf32> to vector<8x8xf32>
    %46 = arith.addf %43, %45 : vector<8x8xf32>
    %cst_26 = arith.constant 0.000000e+00 : f32
    %47 = vector.broadcast %cst_26 : f32 to vector<8x8xf32>
    %48 = arith.maximumf %46, %47 : vector<8x8xf32>
    %49 = arith.truncf %48 : vector<8x8xf32> to vector<8x8xbf16>
    %c0_27 = arith.constant 0 : index
    %c0_28 = arith.constant 0 : index
    %50 = vector.load %arg11[%c0_27, %c0_28] : memref<8x16xbf16, #tpu.memory_space<vmem>>, vector<8x16xbf16>
    %cst_29 = arith.constant dense<0.000000e+00> : vector<8x16xf32>
    %51 = tpu.matmul %49, %50, %cst_29 {dimension_numbers = #tpu.dot_dimension_numbers<[1], [0], [0], [1], [0, 0, 1, 1], [], []>} : vector<8x8xbf16>, vector<8x16xbf16>, vector<8x16xf32> -> vector<8x16xf32>
    %c0_30 = arith.constant 0 : index
    %c0_31 = arith.constant 0 : index
    %52 = vector.load %arg12[%c0_30, %c0_31] : memref<1x16xf32, #tpu.memory_space<vmem>>, vector<1x16xf32>
    %53 = vector.broadcast %52 : vector<1x16xf32> to vector<8x16xf32>
    %54 = arith.addf %51, %53 : vector<8x16xf32>
    %cst_32 = arith.constant 0.000000e+00 : f32
    %55 = vector.broadcast %cst_32 : f32 to vector<8x16xf32>
    %56 = arith.maximumf %54, %55 : vector<8x16xf32>
    %57 = arith.truncf %56 : vector<8x16xf32> to vector<8x16xbf16>
    %c0_33 = arith.constant 0 : index
    %c0_34 = arith.constant 0 : index
    %58 = vector.load %arg13[%c0_33, %c0_34] : memref<16x128xbf16, #tpu.memory_space<vmem>>, vector<16x128xbf16>
    %cst_35 = arith.constant dense<0.000000e+00> : vector<8x128xf32>
    %59 = tpu.matmul %57, %58, %cst_35 {dimension_numbers = #tpu.dot_dimension_numbers<[1], [0], [0], [1], [0, 0, 1, 1], [], []>} : vector<8x16xbf16>, vector<16x128xbf16>, vector<8x128xf32> -> vector<8x128xf32>
    %c0_36 = arith.constant 0 : index
    %c0_37 = arith.constant 0 : index
    %60 = vector.load %arg14[%c0_36, %c0_37] : memref<1x128xf32, #tpu.memory_space<vmem>>, vector<1x128xf32>
    %61 = vector.broadcast %60 : vector<1x128xf32> to vector<8x128xf32>
    %62 = arith.addf %59, %61 : vector<8x128xf32>
    %c0_38 = arith.constant 0 : index
    %c0_39 = arith.constant 0 : index
    %63 = vector.load %arg15[%c0_38, %c0_39] : memref<8x128xf32, #tpu.memory_space<vmem>>, vector<8x128xf32>
    tpu.vector_store %arg15[%c0_38, %c0_39], %62 {strides = array<i32>} : memref<8x128xf32, #tpu.memory_space<vmem>>, vector<8x128xf32>,
    %64 = tpu.iota {dimensions = array<i32: 1>} : vector<8x128xi32>
    %c5_i32_40 = arith.constant 5 : i32
    %65 = vector.broadcast %c5_i32_40 : i32 to vector<8x128xi32>
    %66 = arith.cmpi slt, %64, %65 : vector<8x128xi32>
    %c10_i32 = arith.constant 10 : i32
    %67 = vector.broadcast %c10_i32 : i32 to vector<8x128xi32>
    %68 = arith.cmpi slt, %64, %67 : vector<8x128xi32>
    %c5_i32_41 = arith.constant 5 : i32
    %69 = tpu.dynamic_rotate %24 by %c5_i32_41 dim 1 : vector<8x128xf32>, i32 -> vector<8x128xf32>
    %c15_i32 = arith.constant 15 : i32
    %70 = vector.broadcast %c15_i32 : i32 to vector<8x128xi32>
    %71 = arith.cmpi slt, %64, %70 : vector<8x128xi32>
    %c10_i32_42 = arith.constant 10 : i32
    %72 = tpu.dynamic_rotate %39 by %c10_i32_42 dim 1 : vector<8x128xf32>, i32 -> vector<8x128xf32>
    %cst_43 = arith.constant 0.000000e+00 : f32
    %73 = vector.broadcast %cst_43 : f32 to vector<8x128xf32>
    %74 = arith.select %71, %72, %73 : vector<8x128xi1>, vector<8x128xf32>
    %75 = arith.select %68, %69, %74 : vector<8x128xi1>, vector<8x128xf32>
    %76 = arith.select %66, %23, %75 : vector<8x128xi1>, vector<8x128xf32>
    %c0_44 = arith.constant 0 : index
    %c0_45 = arith.constant 0 : index
    %77 = vector.load %arg16[%c0_44, %c0_45] : memref<8x128xf32, #tpu.memory_space<vmem>>, vector<8x128xf32>
    tpu.vector_store %arg16[%c0_44, %c0_45], %76 {strides = array<i32>} : memref<8x128xf32, #tpu.memory_space<vmem>>, vector<8x128xf32>,
    return
  }
  func.func @transform_0(%arg0: i32) -> (i32, i32) {
    %c0_i32 = arith.constant 0 : i32
    %c0_i32_0 = arith.constant 0 : i32
    return %arg0, %c0_i32 : i32, i32
  }
  func.func @transform_1(%arg0: i32) -> (i32, i32) {
    %c0_i32 = arith.constant 0 : i32
    %c0_i32_0 = arith.constant 0 : i32
    return %arg0, %c0_i32 : i32, i32
  }
  func.func @transform_2(%arg0: i32) -> (i32, i32) {
    %c0_i32 = arith.constant 0 : i32
    %c0_i32_0 = arith.constant 0 : i32
    %c0_i32_1 = arith.constant 0 : i32
    return %c0_i32, %c0_i32_0 : i32, i32
  }
  func.func @transform_3(%arg0: i32) -> (i32, i32) {
    %c0_i32 = arith.constant 0 : i32
    %c0_i32_0 = arith.constant 0 : i32
    %c0_i32_1 = arith.constant 0 : i32
    return %c0_i32, %c0_i32_0 : i32, i32
  }
  func.func @transform_4(%arg0: i32) -> (i32, i32) {
    %c0_i32 = arith.constant 0 : i32
    %c0_i32_0 = arith.constant 0 : i32
    %c0_i32_1 = arith.constant 0 : i32
    return %c0_i32, %c0_i32_0 : i32, i32
  }
  func.func @transform_5(%arg0: i32) -> (i32, i32) {
    %c0_i32 = arith.constant 0 : i32
    %c0_i32_0 = arith.constant 0 : i32
    %c0_i32_1 = arith.constant 0 : i32
    return %c0_i32, %c0_i32_0 : i32, i32
  }
  func.func @transform_6(%arg0: i32) -> (i32, i32) {
    %c0_i32 = arith.constant 0 : i32
    %c0_i32_0 = arith.constant 0 : i32
    %c0_i32_1 = arith.constant 0 : i32
    return %c0_i32, %c0_i32_0 : i32, i32
  }
  func.func @transform_7(%arg0: i32) -> (i32, i32) {
    %c0_i32 = arith.constant 0 : i32
    %c0_i32_0 = arith.constant 0 : i32
    %c0_i32_1 = arith.constant 0 : i32
    return %c0_i32, %c0_i32_0 : i32, i32
  }
  func.func @transform_8(%arg0: i32) -> (i32, i32) {
    %c0_i32 = arith.constant 0 : i32
    %c0_i32_0 = arith.constant 0 : i32
    %c0_i32_1 = arith.constant 0 : i32
    return %c0_i32, %c0_i32_0 : i32, i32
  }
  func.func @transform_9(%arg0: i32) -> (i32, i32) {
    %c0_i32 = arith.constant 0 : i32
    %c0_i32_0 = arith.constant 0 : i32
    %c0_i32_1 = arith.constant 0 : i32
    return %c0_i32, %c0_i32_0 : i32, i32
  }
  func.func @transform_10(%arg0: i32) -> (i32, i32) {
    %c0_i32 = arith.constant 0 : i32
    %c0_i32_0 = arith.constant 0 : i32
    %c0_i32_1 = arith.constant 0 : i32
    return %c0_i32, %c0_i32_0 : i32, i32
  }
  func.func @transform_11(%arg0: i32) -> (i32, i32) {
    %c0_i32 = arith.constant 0 : i32
    %c0_i32_0 = arith.constant 0 : i32
    %c0_i32_1 = arith.constant 0 : i32
    return %c0_i32, %c0_i32_0 : i32, i32
  }
  func.func @transform_12(%arg0: i32) -> (i32, i32) {
    %c0_i32 = arith.constant 0 : i32
    %c0_i32_0 = arith.constant 0 : i32
    %c0_i32_1 = arith.constant 0 : i32
    return %c0_i32, %c0_i32_0 : i32, i32
  }
  func.func @transform_13(%arg0: i32) -> (i32, i32) {
    %c0_i32 = arith.constant 0 : i32
    %c0_i32_0 = arith.constant 0 : i32
    %c0_i32_1 = arith.constant 0 : i32
    return %c0_i32, %c0_i32_0 : i32, i32
  }
  func.func @transform_14(%arg0: i32) -> (i32, i32) {
    %c0_i32 = arith.constant 0 : i32
    %c0_i32_0 = arith.constant 0 : i32
    return %arg0, %c0_i32 : i32, i32
  }
  func.func @transform_15(%arg0: i32) -> (i32, i32) {
    %c0_i32 = arith.constant 0 : i32
    %c0_i32_0 = arith.constant 0 : i32
    return %arg0, %c0_i32 : i32, i32
  }
}

</mosaic_0001>

<bundles_post_ra>
// kernel: vae_forward.1
= control target key start
LH: loop header
LB: loop body
LE: loop exit
PB: predicated region body
PF: predicated region fallthrough
CT: control target
= control target key end

     0   :  { %s628_s0 = inlined_call_operand.vmem [shape: f32[8,128], index: 0, kind: input, shape index: {}]   ;;  %s629_s1 = inlined_call_operand.vmem [shape: f32[8,8], index: 1, kind: input, shape index: {}]   ;;  %s630_s2 = inlined_call_operand.vmem [shape: bf16[128,16], index: 2, kind: input, shape index: {}]   ;;  %s631_s3 = inlined_call_operand.vmem [shape: f32[1,16], index: 3, kind: input, shape index: {}]   ;;  %s632_s4 = inlined_call_operand.vmem [shape: bf16[16,8], index: 4, kind: input, shape index: {}]   ;;  %s633_s5 = inlined_call_operand.vmem [shape: f32[1,8], index: 5, kind: input, shape index: {}]   ;;  %s634_s6 = inlined_call_operand.vmem [shape: bf16[8,256], index: 6, kind: input, shape index: {}]   ;;  %s635_s7 = inlined_call_operand.vmem [shape: f32[1,256], index: 7, kind: input, shape index: {}]   ;;  %s636_s8 = inlined_call_operand.vmem [shape: bf16[8,8], index: 8, kind: input, shape index: {}]   ;;  %s637_s9 = inlined_call_operand.vmem [shape: f32[1,8], index: 9, kind: input, shape index: {}]   ;;  %s638_s10 = inlined_call_operand.vmem [shape: bf16[8,16], index: 10, kind: input, shape index: {}]   ;;  %s639_s11 = inlined_call_operand.vmem [shape: f32[1,16], index: 11, kind: input, shape index: {}]   ;;  %s640_s12 = inlined_call_operand.vmem [shape: bf16[16,128], index: 12, kind: input, shape index: {}]   ;;  %s641_s13 = inlined_call_operand.vmem [shape: f32[1,128], index: 13, kind: input, shape index: {}]   ;;  %s642_s14 = inlined_call_operand.hbm [shape: f32[8,128], index: 14, kind: output, shape index: {0}]   ;;  %s643_s15 = inlined_call_operand.vmem [shape: f32[8,128], index: 15, kind: output, shape index: {1}]  }
   0x1   :  { %v422_v0 = vld [vmem:[%s630_s2 + $0x38] sm:$0xff]  ;;  %v421_v1 = vld [vmem:[%s630_s2 + $0x30] sm:$0xff] }
   0x2   :  { %121 = vmatpush.bf16.msra.mxu0 %v422_v0 }
   0x3   :  { %21 = vsyncpa [#allocation3], 0  ;;  %v420_v2 = vld [vmem:[%s630_s2 + $0x28] sm:$0xff]  ;;  %v419_v3 = vld [vmem:[%s630_s2 + $0x20] sm:$0xff]  ;;  %vm148_vm0 = vcmask 130048   ;;  %vm183_vm1 = vcmask 1043456   ;;  %v216_v24 = vlaneseq }
   0x4   :  { %v418_v4 = vld [vmem:[%s630_s2 + $0x18] sm:$0xff]  ;;  %v417_v5 = vld [vmem:[%s630_s2 + $0x10] sm:$0xff]  ;;  %v416_v6 = vld [vmem:[%s630_s2 + $0x8] sm:$0xff]  ;;  %vm179_vm5 = vcmask 64512   ;;  %v462_v28 = vmov 1.0   ;;  %s465_s21 = smov [#allocation2]  }
   0x5   :  { %v415_v7 = vld [vmem:[%s630_s2] sm:$0xff]  ;;  %v217_v25 = vshrl.u32 %v216_v24, 7  ;;  %v219_v26 = vand.u32 127, %v216_v24  ;;  %s351_s22 = sshll.u32 %s465_s21, 4  ;;  %s352_s22 = int_to_ptr.vmem [resolvable:$true] %s351_s22 }
   0x6   :  { %122 = vmatpush.bf16.msra.mxu0 %v421_v1  ;;  %v51_v8 = vld [vmem:[%s628_s0] sm:$0xff]  ;;  %s353_s0 = sshll.u32 %s642_s14, 4  ;;  %s354_s0 = int_to_ptr.hbm [resolvable:$true] %s353_s0 }
   0x7   :  { %v52_v9 = vpack.c.bf16 %v51_v8, %v51_v8  ;;  %v423_v10 = vld [vmem:[%s632_s4] sm:$0xff]  ;;  %vm220_vm2 = vcmp.eq.s32.totalorder %v217_v25, %v219_v26  ;;  %vm221_vm3 = vcmp.lt.s32.totalorder %v219_v26, 5  ;;  %vm339_vm6 = vcmp.lt.s32.totalorder %v219_v26, 15 }
   0x8   :  { %159 = vmatpush.bf16.msra.mxu1 %v423_v10  ;;  %v429_v11 = vld [vmem:[%s631_s3] ss:$0 sm:$0xff]  ;;  %vm222_vm4 = vmand %vm220_vm2, %vm221_vm3  ;;  %vm336_vm7 = vcmp.lt.s32.totalorder %v219_v26, 10 }
   0x9   :  { %v167_v17 = vld [vmem:[%s634_s6] sm:$0xff] }
   0xa   :  { %123 = vmatpush.bf16.msra.mxu0 %v420_v2  ;;  %v175_v18 = vunpack.c.l.b16 %v167_v17  ;;  %v176_v19 = vunpack.c.h.b16 %v167_v17  ;;  %v225_v27 = vld [vmem:[%s629_s1] sm:$0xff] }
   0xb   :  { %v430_v29 = vld [vmem:[%s633_s5] ss:$0 sm:$0xff]  ;;  %s463_s5 = smov 10  }
   0xc   :  { %v177_v20 = vpack.c.b16 %v175_v18, %v175_v18  ;;  %v178_v21 = vpack.c.b16 %v176_v19, %v176_v19  ;;  %406 = vmatpush.msk.msrb.mxu1 %vm222_vm4, %v462_v28  ;;  %v255_v35 = vld [vmem:[%s636_s8] sm:$0xf] }
   0xd   :  { %v264_v36 = vsel %vm183_vm1, %v255_v35, 0  ;;  %v168_v37 = vld [vmem:[%s635_s7] sm:$0x3]  ;;  %s464_s7 = smov 5  }
   0xe   :  { %124 = vmatpush.bf16.msra.mxu0 %v419_v3  ;;  %v185_v22 = vsel %vm183_vm1, %v177_v20, 0  ;;  %v188_v23 = vsel %vm183_vm1, %v178_v21, 0  ;;  %v171_v38 = vperm.slane %v168_v37, 1  ;;  %v170_v46 = vperm.slane %v168_v37, 0  ;;  %v281_v53 = vld [vmem:[%s638_s10] sm:$0xf] }
   0xf   :  { %197 = vmatpush.bf16.msra.mxu2 %v185_v22  ;;  %210 = vmatpush.bf16.msra.mxu3 %v188_v23  ;;  %v290_v54 = vsel %vm183_vm1, %v281_v53, 0  ;;  %v424_v55 = vld [vmem:[%s640_s12] sm:$0xff] }
  0x10   :  { %v431_v61 = vld [vmem:[%s637_s9] ss:$0 sm:$0xff] }
  0x11   :  { %v432_v3 = vld [vmem:[%s639_s11] ss:$0 sm:$0xff] }
  0x12   :  { %125 = vmatpush.bf16.msra.mxu0 %v418_v4 }
  0x13   :  { %273 = vmatpush.bf16.msrb.mxu2 %v264_v36  ;;  %299 = vmatpush.bf16.msrb.mxu3 %v290_v54 }
  0x16   :  { %126 = vmatpush.bf16.msra.mxu0 %v417_v5 }
  0x1a   :  { %127 = vmatpush.bf16.msra.mxu0 %v416_v6 }
  0x1e   :  { %128 = vmatpush.bf16.msra.mxu0 %v415_v7 }
  0x21   :  { %129 = vmatmul.bf16.vlgmr.msra.gmra.mxu0 %v52_v9  ;;  %v433_v9 = vld [vmem:[%s641_s13] ss:$0 sm:$0xff] }
  0x9e   :  { %v130_v12 = vpop.f32.mrf.mxu0 }
  0x9f   :  { %v131_v13 = vadd.f32 %v429_v11, %v130_v12 }
  0xa1   :  { %v134_v14 = vmax.f32 %v131_v13, 0.0 }
  0xa3   :  { %v135_v15 = vpack.c.bf16 %v134_v14, %v134_v14 }
  0xa5   :  { %402 = vmatmul.msk.bf16.vlgmr.msra.gmra.mxu1 %vm148_vm0, %v135_v15 }
  0xa6   :  { %v132_v16 = vpop.f32.mrf.mxu0  ;;  %329 = vmatpush.bf16.msra.mxu1 %v424_v55 }
  0xb5   :  { %407 = vmatmul.msk.f32.vlgmr.msrb.gmra.mxu1 %vm179_vm5, %v225_v27 }
 0x122   :  { %v161_v30 = vpop.f32.mrf.mxu1 }
 0x123   :  { %v162_v31 = vadd.f32 %v430_v29, %v161_v30 }
 0x125   :  { %v165_v32 = vmax.f32 %v162_v31, 0.0 }
 0x127   :  { %v166_v33 = vpack.c.bf16 %v165_v32, %v165_v32 }
 0x129   :  { %403 = vmatmul.msk.bf16.vlgmr.msra.gmra.mxu2 %vm179_vm5, %v166_v33  ;;  %404 = vmatmul.msk.bf16.vlgmr.msra.gmra.mxu3 %vm179_vm5, %v166_v33 }
 0x12a   :  { %v163_v34 = vpop.f32.mrf.mxu1 }
 0x132   :  { %v246_v47 = vpop.f32.mrf.mxu1 }
 0x1ac   :  { %v199_v39 = vpop.f32.mrf.mxu2  ;;  %v212_v40 = vpop.f32.mrf.mxu3 }
 0x1ad   :  { %v213_v41 = vadd.f32 %v212_v40, %v171_v38  ;;  %v200_v49 = vadd.f32 %v199_v39, %v170_v46 }
 0x1af   :  { %v249_v42 = vmul.f32 0.5, %v213_v41 }
 0x1b1   :  { %v250_v43 = vmul.f32 1.442695, %v249_v42 }
 0x1b3   :  { %434 = vpow2.f32 %v250_v43 }
 0x1b4   :  { %v201_v44 = vpop.f32.mrf.mxu2  ;;  %v214_v45 = vpop.f32.mrf.mxu3 }
 0x1b9   :  { %v435_v48 = vpop.eup %434 }
 0x1ba   :  { %v252_v50 = vmul.f32 %v435_v48, %v246_v47 }
 0x1bc   :  { %v253_v51 = vadd.f32 %v252_v50, %v200_v49 }
 0x1be   :  { %340 = vrot.lane.b32.xlu0 %v253_v51, %s463_s5  ;;  %v254_v52 = vpack.c.bf16 %v253_v51, %v253_v51 }
 0x1c0   :  { %408 = vmatmul.msk.bf16.vlgmr.msrb.gmra.mxu2 %vm179_vm5, %v254_v52 }
 0x1c6   :  { %337 = vrot.lane.b32.xlu0 %v213_v41, %s464_s7 }
 0x230   :  { %v341_v56 = vpop.permute.xlu0 %340 }
 0x231   :  { %v342_v57 = vsel %vm339_vm6, %v341_v56, 0.0 }
 0x238   :  { %v338_v58 = vpop.permute.xlu0 %337 }
 0x239   :  { %v343_v59 = vsel %vm336_vm7, %v338_v58, %v342_v57 }
 0x23a   :  { %v344_v60 = vsel %vm221_vm3, %v200_v49, %v343_v59 }
 0x23b   :  { %345 = vst [vmem:[%s643_s15] sm:$0xff] %v344_v60 }
 0x243   :  { %v275_v62 = vpop.f32.mrf.mxu2 }
 0x244   :  { %v276_v63 = vadd.f32 %v431_v61, %v275_v62 }
 0x246   :  { %v279_v0 = vmax.f32 %v276_v63, 0.0 }
 0x248   :  { %v280_v1 = vpack.c.bf16 %v279_v0, %v279_v0 }
 0x24a   :  { %409 = vmatmul.msk.bf16.vlgmr.msrb.gmra.mxu3 %vm179_vm5, %v280_v1 }
 0x24b   :  { %v277_v2 = vpop.f32.mrf.mxu2 }
 0x2cd   :  { %v301_v4 = vpop.f32.mrf.mxu3 }
 0x2ce   :  { %v302_v5 = vadd.f32 %v432_v3, %v301_v4 }
 0x2d0   :  { %v305_v6 = vmax.f32 %v302_v5, 0.0 }
 0x2d2   :  { %v306_v7 = vpack.c.bf16 %v305_v6, %v305_v6 }
 0x2d4   :  { %414 = vmatmul.msk.bf16.vlgmr.msra.gmra.mxu1 %vm148_vm0, %v306_v7 }
 0x2d5   :  { %v303_v8 = vpop.f32.mrf.mxu3 }
 0x351   :  { %v331_v10 = vpop.f32.mrf.mxu1 }
 0x352   :  { %v332_v11 = vadd.f32 %v433_v9, %v331_v10 }
 0x354   :  { %335 = vst [vmem:[#allocation2] sm:$0xff] %v332_v11 }
 0x355   :  { %356 = dma.vmem_to_hbm [thread:$0]  %s352_s22, 128, %s354_s0, [#allocation3]  }
 0x359   :  { %v333_v12 = vpop.f32.mrf.mxu1 }
 0x35a   :  { %460 = dma.done.wait [#allocation3], 128  }
 0x35b   :  { %461 = vsyncadd [#allocation3], 4294967168 }
 0x35c   :  { %365 = vsyncpa [#allocation3], 1 }

</bundles_post_ra>
